<compile_context>
chip_gen: v7x
topology: tpu7x:2x2x1
jax: 0.10.0
libtpu: 0.0.40
codegen_flags: <defaults>
</compile_context>

<pallas_src>
import functools
import math

import jax
import jax.numpy as jnp
from jax.experimental import pallas as pl
from jax.experimental.pallas import tpu as pltpu

_LN_EPS = 1e-5
_MAX_ROW_TILE = 256


# ----------------------------------------------------------------------------
# helpers
# ----------------------------------------------------------------------------
def _round_up(x, m):
    return (x + m - 1) // m * m


def _row_tiling(M):
    """Pick (padded_M, row_tile).  Rows padded to a multiple of 8; large M is
    tiled so the grid pipelines and can shard across TensorCores."""
    if M <= _MAX_ROW_TILE:
        m_pad = _round_up(M, 8)
        return m_pad, m_pad
    tm = _MAX_ROW_TILE
    return _round_up(M, tm), tm


def _pad_rows(x, m_pad):
    M = x.shape[0]
    if m_pad == M:
        return x
    return jnp.pad(x, ((0, m_pad - M), (0, 0)))


def _layernorm(x, g, b):
    mu = jnp.mean(x, axis=-1, keepdims=True)
    xc = x - mu
    var = jnp.mean(xc * xc, axis=-1, keepdims=True)
    return xc * jax.lax.rsqrt(var + _LN_EPS) * g + b


# ----------------------------------------------------------------------------
# Pallas kernels
# ----------------------------------------------------------------------------
def _linear_kernel(x_ref, w_ref, b_ref, o_ref):
    y = jnp.dot(x_ref[...], w_ref[...], preferred_element_type=jnp.float32)
    o_ref[...] = (y + b_ref[...]).astype(o_ref.dtype)


def pallas_linear(x, w, b):
    """x:(M,K) @ w:(K,N) + b -> (M,N); row-tiled, pipelined, megacore-parallel."""
    M, K = x.shape
    N = w.shape[1]
    m_pad, tm = _row_tiling(M)
    out = pl.pallas_call(
        _linear_kernel,
        out_shape=jax.ShapeDtypeStruct((m_pad, N), jnp.float32),
        grid=(m_pad // tm,),
        in_specs=[
            pl.BlockSpec((tm, K), lambda i: (i, 0)),
            pl.BlockSpec((K, N), lambda i: (0, 0)),
            pl.BlockSpec((1, N), lambda i: (0, 0)),
        ],
        out_specs=pl.BlockSpec((tm, N), lambda i: (i, 0)),
        compiler_params=pltpu.CompilerParams(dimension_semantics=("parallel",)),
    )(_pad_rows(x, m_pad), w, b.reshape(1, N))
    return out[:M]


def _mlp_kernel(x_ref, w1_ref, b1_ref, g_ref, bln_ref, w2_ref, b2_ref, o_ref):
    """Fused MLP: Linear -> Dropout(id) -> LayerNorm -> GELU -> Linear."""
    x = x_ref[...].astype(jnp.float32)
    h = jnp.dot(x, w1_ref[...], preferred_element_type=jnp.float32) + b1_ref[...]
    h = _layernorm(h, g_ref[...], bln_ref[...])
    h = jax.nn.gelu(h, approximate=True)
    y = jnp.dot(h, w2_ref[...], preferred_element_type=jnp.float32) + b2_ref[...]
    o_ref[...] = y.astype(o_ref.dtype)


def pallas_mlp(p, x):
    M, K = x.shape
    H = p["W1"].shape[1]
    N = p["W2"].shape[1]
    m_pad, tm = _row_tiling(M)
    out = pl.pallas_call(
        _mlp_kernel,
        out_shape=jax.ShapeDtypeStruct((m_pad, N), jnp.float32),
        grid=(m_pad // tm,),
        in_specs=[
            pl.BlockSpec((tm, K), lambda i: (i, 0)),
            pl.BlockSpec((K, H), lambda i: (0, 0)),
            pl.BlockSpec((1, H), lambda i: (0, 0)),
            pl.BlockSpec((1, H), lambda i: (0, 0)),
            pl.BlockSpec((1, H), lambda i: (0, 0)),
            pl.BlockSpec((H, N), lambda i: (0, 0)),
            pl.BlockSpec((1, N), lambda i: (0, 0)),
        ],
        out_specs=pl.BlockSpec((tm, N), lambda i: (i, 0)),
        compiler_params=pltpu.CompilerParams(dimension_semantics=("parallel",)),
    )(_pad_rows(x, m_pad), p["W1"], p["b1"].reshape(1, H),
      p["ln_g"].reshape(1, H), p["ln_b"].reshape(1, H),
      p["W2"], p["b2"].reshape(1, N))
    return out[:M]


def _ln_qkv_kernel(x_ref, te_ref, g_ref, b_ref, wqk_ref, bqk_ref, wv_ref, bv_ref,
                   q_ref, k_ref, v_ref):
    """Fused: LN1 -> (+type_embed) -> fused QK projection; V projected from LN."""
    x = x_ref[...].astype(jnp.float32)
    ln = _layernorm(x, g_ref[...], b_ref[...])
    qv = ln + te_ref[...]
    qk = jnp.dot(qv, wqk_ref[...], preferred_element_type=jnp.float32) + bqk_ref[...]
    v = jnp.dot(ln, wv_ref[...], preferred_element_type=jnp.float32) + bv_ref[...]
    D = v_ref.shape[-1]
    q_ref[...] = qk[:, :D].astype(q_ref.dtype)
    k_ref[...] = qk[:, D:].astype(k_ref.dtype)
    v_ref[...] = v.astype(v_ref.dtype)


def pallas_ln_qkv(tgt2d, te2d, ln_g, ln_b, wqk, bqk, wv, bv):
    M, D = tgt2d.shape
    m_pad, tm = _row_tiling(M)
    q, k, v = pl.pallas_call(
        _ln_qkv_kernel,
        out_shape=[jax.ShapeDtypeStruct((m_pad, D), jnp.float32)] * 3,
        grid=(m_pad // tm,),
        in_specs=[
            pl.BlockSpec((tm, D), lambda i: (i, 0)),
            pl.BlockSpec((tm, D), lambda i: (i, 0)),
            pl.BlockSpec((1, D), lambda i: (0, 0)),
            pl.BlockSpec((1, D), lambda i: (0, 0)),
            pl.BlockSpec((D, 2 * D), lambda i: (0, 0)),
            pl.BlockSpec((1, 2 * D), lambda i: (0, 0)),
            pl.BlockSpec((D, D), lambda i: (0, 0)),
            pl.BlockSpec((1, D), lambda i: (0, 0)),
        ],
        out_specs=[pl.BlockSpec((tm, D), lambda i: (i, 0))] * 3,
        compiler_params=pltpu.CompilerParams(dimension_semantics=("parallel",)),
    )(_pad_rows(tgt2d, m_pad), _pad_rows(te2d, m_pad),
      ln_g.reshape(1, D), ln_b.reshape(1, D),
      wqk, bqk.reshape(1, 2 * D), wv, bv.reshape(1, D))
    return q[:M], k[:M], v[:M]


def _attn_kernel(q_ref, k_ref, v_ref, m_ref, res_ref, wo_ref, bo_ref, o_ref, *, nhead):
    """All heads of one batch element: scores -> masked softmax -> context
    -> output projection -> residual add.  Heads are split in-kernel (no HBM
    transposes); 1/sqrt(dh) is pre-folded into Wq."""
    T = q_ref.shape[1]
    D = q_ref.shape[2]
    dh = D // nhead
    q = q_ref[0].reshape(T, nhead, dh)
    k = k_ref[0].reshape(T, nhead, dh)
    v = v_ref[0].reshape(T, nhead, dh)

    # (H, T, T) scores, batched over heads on the MXU.
    s = jnp.einsum("thd,shd->hts", q, k, preferred_element_type=jnp.float32)
    m = m_ref[0]                                     # (1, T), 1.0 = padded key
    s = jnp.where(m[None, :, :] > 0.5, jnp.float32(-1e30), s)
    s = s - jnp.max(s, axis=-1, keepdims=True)
    p = jnp.exp(s)
    p = p * pl.reciprocal(jnp.sum(p, axis=-1, keepdims=True), approx=True)

    o = jnp.einsum("hts,shd->thd", p, v, preferred_element_type=jnp.float32)
    o = o.reshape(T, D)
    out = res_ref[0] + jnp.dot(o, wo_ref[...], preferred_element_type=jnp.float32) \
        + bo_ref[...]
    o_ref[0] = out.astype(o_ref.dtype)


def pallas_attention_block(q, k, v, mask_f, res, wo, bo, nhead):
    """q,k,v,res: (B,T,D); mask_f: (B,1,T) float (1.0 = padded key)."""
    B, T, D = q.shape
    return pl.pallas_call(
        functools.partial(_attn_kernel, nhead=nhead),
        out_shape=jax.ShapeDtypeStruct((B, T, D), jnp.float32),
        grid=(B,),
        in_specs=[
            pl.BlockSpec((1, T, D), lambda b: (b, 0, 0)),
            pl.BlockSpec((1, T, D), lambda b: (b, 0, 0)),
            pl.BlockSpec((1, T, D), lambda b: (b, 0, 0)),
            pl.BlockSpec((1, 1, T), lambda b: (b, 0, 0)),
            pl.BlockSpec((1, T, D), lambda b: (b, 0, 0)),
            pl.BlockSpec((D, D), lambda b: (0, 0)),
            pl.BlockSpec((1, D), lambda b: (0, 0)),
        ],
        out_specs=pl.BlockSpec((1, T, D), lambda b: (b, 0, 0)),
        compiler_params=pltpu.CompilerParams(dimension_semantics=("parallel",)),
    )(q, k, v, mask_f, res, wo, bo.reshape(1, D))


def _ln_ffn_kernel(x_ref, g_ref, b_ref, w1_ref, b1_ref, w2_ref, b2_ref, o_ref):
    """Fused: LN2 -> Linear -> GELU -> Linear -> residual add."""
    x = x_ref[...].astype(jnp.float32)
    ln = _layernorm(x, g_ref[...], b_ref[...])
    h = jnp.dot(ln, w1_ref[...], preferred_element_type=jnp.float32) + b1_ref[...]
    h = jax.nn.gelu(h, approximate=True)
    y = jnp.dot(h, w2_ref[...], preferred_element_type=jnp.float32) + b2_ref[...]
    o_ref[...] = (x + y).astype(o_ref.dtype)


def pallas_ln_ffn(tgt2d, ln_g, ln_b, w1, b1, w2, b2):
    M, D = tgt2d.shape
    F = w1.shape[1]
    m_pad, tm = _row_tiling(M)
    out = pl.pallas_call(
        _ln_ffn_kernel,
        out_shape=jax.ShapeDtypeStruct((m_pad, D), jnp.float32),
        grid=(m_pad // tm,),
        in_specs=[
            pl.BlockSpec((tm, D), lambda i: (i, 0)),
            pl.BlockSpec((1, D), lambda i: (0, 0)),
            pl.BlockSpec((1, D), lambda i: (0, 0)),
            pl.BlockSpec((D, F), lambda i: (0, 0)),
            pl.BlockSpec((1, F), lambda i: (0, 0)),
            pl.BlockSpec((F, D), lambda i: (0, 0)),
            pl.BlockSpec((1, D), lambda i: (0, 0)),
        ],
        out_specs=pl.BlockSpec((tm, D), lambda i: (i, 0)),
        compiler_params=pltpu.CompilerParams(dimension_semantics=("parallel",)),
    )(_pad_rows(tgt2d, m_pad), ln_g.reshape(1, D), ln_b.reshape(1, D),
      w1, b1.reshape(1, F), w2, b2.reshape(1, D))
    return out[:M]


# ----------------------------------------------------------------------------
# Forward pass (glue in plain JAX, all hot compute in the fused Pallas kernels)
# ----------------------------------------------------------------------------
def full_transformer_forward(params, cfg, edge_index, edge_type, node_type_ids,
                             edge_lens, lm_all_states, lm_mask0):
    B, T_lm, d_sent = lm_all_states.shape
    d_model = cfg["d_model"]
    nhead = cfg["nhead"]

    # --- get_graph_edge_embedding -------------------------------------------
    edge_vec = jax.nn.one_hot(edge_type, cfg["n_etype"], dtype=jnp.float32)
    node_type = node_type_ids.reshape(-1)
    head_vec = jax.nn.one_hot(node_type[edge_index[0]], cfg["n_ntype"], dtype=jnp.float32)
    tail_vec = jax.nn.one_hot(node_type[edge_index[1]], cfg["n_ntype"], dtype=jnp.float32)
    feat = jnp.concatenate([edge_vec, head_vec, tail_vec], axis=1)     # (E, n_etype+2*n_ntype)
    edge_embeddings = pallas_mlp(params["edge_encoder"], feat)         # (E, d_model)
    # TODO(synk): matched indices from Matcher.match omitted (external GloVe/tokenizer IO).

    # --- construct_token (glue, python loop over static edge_lens) ----------
    max_len = max(edge_lens)
    graph_tokens, graph_mask = [], []
    start = 0
    for L in edge_lens:
        emb = edge_embeddings[start:start + L]
        emb = jnp.pad(emb, ((0, max_len - L), (0, 0)))
        graph_tokens.append(emb)
        graph_mask.append(jnp.arange(max_len) >= L)    # True = padded (ignored)
        start += L
    graph_tokens = jnp.stack(graph_tokens)             # (B, e_num, d_model)
    graph_mask = jnp.stack(graph_mask)                 # (B, e_num) bool

    # --- sentence encoder -----------------------------------------------------
    lm_tokens = pallas_linear(lm_all_states.reshape(B * T_lm, d_sent),
                              params["sent_W"], params["sent_b"]
                              ).reshape(B, T_lm, d_model)
    lm_padmask = jnp.logical_not(lm_mask0.astype(bool))                # True = pad

    tgt = jnp.concatenate([lm_tokens, graph_tokens], axis=1)           # (B, T, d)
    tgt_mask = jnp.concatenate([lm_padmask, graph_mask], axis=1)       # (B, T) bool
    T = tgt.shape[1]
    M = B * T
    mask_f = tgt_mask.astype(jnp.float32).reshape(B, 1, T)

    # --- type embeddings (built once, reused every layer) ---------------------
    lm_emb = params["type_embed"][0]
    gr_emb = params["type_embed"][1]
    type_embed = jnp.concatenate(
        [jnp.tile(lm_emb[None, :], (T_lm, 1)),
         jnp.tile(gr_emb[None, :], (T - T_lm, 1))], axis=0)            # (T, d)
    te2d = jnp.broadcast_to(type_embed[None], (B, T, d_model)).reshape(M, d_model)

    # --- transformer layers: 3 fused pallas_calls per layer -------------------
    for lp in params["layers"]:
        a = lp["attn"]
        q2, k2, v2 = pallas_ln_qkv(tgt.reshape(M, d_model), te2d,
                                   lp["ln1_g"], lp["ln1_b"],
                                   a["Wqk"], a["bqk"], a["Wv"], a["bv"])
        tgt = pallas_attention_block(q2.reshape(B, T, d_model),
                                     k2.reshape(B, T, d_model),
                                     v2.reshape(B, T, d_model),
                                     mask_f, tgt, a["Wo"], a["bo"], nhead)
        tgt = pallas_ln_ffn(tgt.reshape(M, d_model), lp["ln2_g"], lp["ln2_b"],
                            lp["ffn_W1"], lp["ffn_b1"], lp["ffn_W2"], lp["ffn_b2"]
                            ).reshape(B, T, d_model)

    # --- qa scorer -------------------------------------------------------------
    graph_score = pallas_mlp(params["qa_scorer"], tgt[:, 0, :])        # (B, 1)

    # TODO(synk): relative-position bias of the custom MultiheadAttention not
    # reproducible (class not provided); return zeros as `rpe`.
    rpe = jnp.zeros((nhead, T, T), dtype=jnp.float32)
    return graph_score, rpe


# ----------------------------------------------------------------------------
# Deterministic parameter init (Q/K weights fused; softmax scale pre-folded)
# ----------------------------------------------------------------------------
def init_params(key, cfg):
    d, dff = cfg["d_model"], cfg["dim_feedforward"]
    d_sent = cfg["d_sentence"]
    edge_in = cfg["n_etype"] + 2 * cfg["n_ntype"]
    dh = d // cfg["nhead"]
    scale = 1.0 / math.sqrt(dh)

    keys = iter(jax.random.split(key, 256))

    def lin(n_in, n_out):
        return (0.02 * jax.random.normal(next(keys), (n_in, n_out), jnp.float32),
                jnp.zeros((n_out,), jnp.float32))

    def mlp(n_in, n_hid, n_out):
        W1, b1 = lin(n_in, n_hid)
        W2, b2 = lin(n_hid, n_out)
        return dict(W1=W1, b1=b1, W2=W2, b2=b2,
                    ln_g=jnp.ones((n_hid,), jnp.float32),
                    ln_b=jnp.zeros((n_hid,), jnp.float32))

    params = {}
    params["type_embed"] = 0.02 * jax.random.normal(next(keys), (2, d), jnp.float32)
    params["sent_W"], params["sent_b"] = lin(d_sent, d)
    params["edge_encoder"] = mlp(edge_in, d, d)
    params["qa_scorer"] = mlp(d, d, 1)

    layers = []
    for _ in range(cfg["layer_num"]):
        Wq, bq = lin(d, d)
        Wk, bk = lin(d, d)
        Wv, bv = lin(d, d)
        Wo, bo = lin(d, d)
        W1, b1 = lin(d, dff)
        W2, b2 = lin(dff, d)
        # Fuse Q and K projections into one (d, 2d) matmul; fold the 1/sqrt(dh)
        # attention scale into the Q half (numerically equivalent).
        Wqk = jnp.concatenate([Wq * scale, Wk], axis=1)
        bqk = jnp.concatenate([bq * scale, bk], axis=0)
        layers.append(dict(
            ln1_g=jnp.ones((d,), jnp.float32), ln1_b=jnp.zeros((d,), jnp.float32),
            ln2_g=jnp.ones((d,), jnp.float32), ln2_b=jnp.zeros((d,), jnp.float32),
            attn=dict(Wqk=Wqk, bqk=bqk, Wv=Wv, bv=bv, Wo=Wo, bo=bo),
            ffn_W1=W1, ffn_b1=b1, ffn_W2=W2, ffn_b2=b2))
    params["layers"] = layers
    return params


# ----------------------------------------------------------------------------
if __name__ == "__main__":
    cfg = dict(layer_num=2, n_ntype=4, n_etype=3, d_sentence=32, d_model=32,
               nhead=4, dim_feedforward=64)

    key = jax.random.PRNGKey(0)
    k_param, k_node, k_etype, k_ei, k_lm = jax.random.split(key, 5)

    params = init_params(k_param, cfg)

    B, T_lm, n_nodes = 2, 8, 5
    edge_lens = [6, 8]
    E = sum(edge_lens)

    node_type_ids = jax.random.randint(k_node, (B, n_nodes), 0, cfg["n_ntype"])
    edge_type = jax.random.randint(k_etype, (E,), 0, cfg["n_etype"])
    edge_index = jax.random.randint(k_ei, (2, E), 0, B * n_nodes)
    lm_all_states = jax.random.normal(k_lm, (B, T_lm, cfg["d_sentence"]), jnp.float32)
    # lm_mask[0]: 1 = valid token (forward negates it to get the padding mask)
    lm_mask0 = jnp.stack([
        (jnp.arange(T_lm) < 6).astype(jnp.int32),
        (jnp.arange(T_lm) < 8).astype(jnp.int32)])

    graph_score, rpe = full_transformer_forward(
        params, cfg, edge_index, edge_type, node_type_ids, edge_lens,
        lm_all_states, lm_mask0)

    jax.block_until_ready(graph_score)
    jax.block_until_ready(rpe)
    assert graph_score.shape == (B, 1)
    assert bool(jnp.all(jnp.isfinite(graph_score)))
    print("KERNEL_OK")
</pallas_src>

<mosaic_0001>
module attributes {stable_mosaic.version = 11 : i64} {
  func.func @_mlp_kernel(%arg0: i32, %arg1: memref<16x11xf32, #tpu.memory_space<vmem>>, %arg2: memref<11x32xf32, #tpu.memory_space<vmem>>, %arg3: memref<1x32xf32, #tpu.memory_space<vmem>>, %arg4: memref<1x32xf32, #tpu.memory_space<vmem>>, %arg5: memref<1x32xf32, #tpu.memory_space<vmem>>, %arg6: memref<32x32xf32, #tpu.memory_space<vmem>>, %arg7: memref<1x32xf32, #tpu.memory_space<vmem>>, %arg8: memref<16x32xf32, #tpu.memory_space<vmem>>) attributes {dimension_semantics = [#tpu.dimension_semantics<parallel>], iteration_bounds = array<i64: 1>, scalar_prefetch = 0 : i64, scratch_operands = 0 : i64, tpu.core_type = #tpu.core_type<tc>, window_params = [{transform_indices = @transform_0, window_bounds = array<i64: 16, 11>}, {pipeline_mode = #tpu.pipeline_mode<synchronous>, transform_indices = @transform_1, window_bounds = array<i64: 11, 32>}, {pipeline_mode = #tpu.pipeline_mode<synchronous>, transform_indices = @transform_2, window_bounds = array<i64: 1, 32>}, {pipeline_mode = #tpu.pipeline_mode<synchronous>, transform_indices = @transform_3, window_bounds = array<i64: 1, 32>}, {pipeline_mode = #tpu.pipeline_mode<synchronous>, transform_indices = @transform_4, window_bounds = array<i64: 1, 32>}, {pipeline_mode = #tpu.pipeline_mode<synchronous>, transform_indices = @transform_5, window_bounds = array<i64: 32, 32>}, {pipeline_mode = #tpu.pipeline_mode<synchronous>, transform_indices = @transform_6, window_bounds = array<i64: 1, 32>}, {transform_indices = @transform_7, window_bounds = array<i64: 16, 32>}]} {
    %c0 = arith.constant 0 : index
    %c0_0 = arith.constant 0 : index
    %0 = vector.load %arg1[%c0, %c0_0] : memref<16x11xf32, #tpu.memory_space<vmem>>, vector<16x11xf32>
    %c0_1 = arith.constant 0 : index
    %c0_2 = arith.constant 0 : index
    %1 = vector.load %arg2[%c0_1, %c0_2] : memref<11x32xf32, #tpu.memory_space<vmem>>, vector<11x32xf32>
    %cst = arith.constant dense<0.000000e+00> : vector<16x32xf32>
    %2 = tpu.matmul %0, %1, %cst {dimension_numbers = #tpu.dot_dimension_numbers<[1], [0], [0], [1], [0, 0, 1, 1], [], []>} : vector<16x11xf32>, vector<11x32xf32>, vector<16x32xf32> -> vector<16x32xf32>
    %c0_3 = arith.constant 0 : index
    %c0_4 = arith.constant 0 : index
    %3 = vector.load %arg3[%c0_3, %c0_4] : memref<1x32xf32, #tpu.memory_space<vmem>>, vector<1x32xf32>
    %4 = vector.broadcast %3 : vector<1x32xf32> to vector<16x32xf32>
    %5 = arith.addf %2, %4 : vector<16x32xf32>
    %c0_5 = arith.constant 0 : index
    %c0_6 = arith.constant 0 : index
    %6 = vector.load %arg4[%c0_5, %c0_6] : memref<1x32xf32, #tpu.memory_space<vmem>>, vector<1x32xf32>
    %c0_7 = arith.constant 0 : index
    %c0_8 = arith.constant 0 : index
    %7 = vector.load %arg5[%c0_7, %c0_8] : memref<1x32xf32, #tpu.memory_space<vmem>>, vector<1x32xf32>
    %cst_9 = arith.constant dense<0.000000e+00> : vector<16xf32>
    %8 = vector.multi_reduction <add>, %5, %cst_9 [1] : vector<16x32xf32> to vector<16xf32>
    %9 = vector.shape_cast %8 : vector<16xf32> to vector<16x1xf32>
    %cst_10 = arith.constant 3.200000e+01 : f32
    %10 = vector.broadcast %cst_10 : f32 to vector<16x1xf32>
    %11 = arith.divf %9, %10 : vector<16x1xf32>
    %12 = vector.broadcast %11 : vector<16x1xf32> to vector<16x32xf32>
    %13 = arith.subf %5, %12 : vector<16x32xf32>
    %14 = arith.mulf %13, %13 : vector<16x32xf32>
    %cst_11 = arith.constant dense<0.000000e+00> : vector<16xf32>
    %15 = vector.multi_reduction <add>, %14, %cst_11 [1] : vector<16x32xf32> to vector<16xf32>
    %16 = vector.shape_cast %15 : vector<16xf32> to vector<16x1xf32>
    %cst_12 = arith.constant 3.200000e+01 : f32
    %17 = vector.broadcast %cst_12 : f32 to vector<16x1xf32>
    %18 = arith.divf %16, %17 : vector<16x1xf32>
    %cst_13 = arith.constant 9.99999974E-6 : f32
    %19 = vector.broadcast %cst_13 : f32 to vector<16x1xf32>
    %20 = arith.addf %18, %19 : vector<16x1xf32>
    %21 = math.rsqrt %20 : vector<16x1xf32>
    %22 = vector.broadcast %21 : vector<16x1xf32> to vector<16x32xf32>
    %23 = arith.mulf %13, %22 : vector<16x32xf32>
    %24 = vector.broadcast %6 : vector<1x32xf32> to vector<16x32xf32>
    %25 = arith.mulf %23, %24 : vector<16x32xf32>
    %26 = vector.broadcast %7 : vector<1x32xf32> to vector<16x32xf32>
    %27 = arith.addf %25, %26 : vector<16x32xf32>
    %28 = arith.mulf %27, %27 : vector<16x32xf32>
    %29 = arith.mulf %27, %28 : vector<16x32xf32>
    %cst_14 = arith.constant 4.471500e-02 : f32
    %30 = vector.broadcast %cst_14 : f32 to vector<16x32xf32>
    %31 = arith.mulf %30, %29 : vector<16x32xf32>
    %32 = arith.addf %27, %31 : vector<16x32xf32>
    %cst_15 = arith.constant 0.797884583 : f32
    %33 = vector.broadcast %cst_15 : f32 to vector<16x32xf32>
    %34 = arith.mulf %33, %32 : vector<16x32xf32>
    %35 = math.tanh %34 : vector<16x32xf32>
    %cst_16 = arith.constant 1.000000e+00 : f32
    %36 = vector.broadcast %cst_16 : f32 to vector<16x32xf32>
    %37 = arith.addf %36, %35 : vector<16x32xf32>
    %cst_17 = arith.constant 5.000000e-01 : f32
    %38 = vector.broadcast %cst_17 : f32 to vector<16x32xf32>
    %39 = arith.mulf %38, %37 : vector<16x32xf32>
    %40 = arith.mulf %27, %39 : vector<16x32xf32>
    %c0_18 = arith.constant 0 : index
    %c0_19 = arith.constant 0 : index
    %41 = vector.load %arg6[%c0_18, %c0_19] : memref<32x32xf32, #tpu.memory_space<vmem>>, vector<32x32xf32>
    %cst_20 = arith.constant dense<0.000000e+00> : vector<16x32xf32>
    %42 = tpu.matmul %40, %41, %cst_20 {dimension_numbers = #tpu.dot_dimension_numbers<[1], [0], [0], [1], [0, 0, 1, 1], [], []>} : vector<16x32xf32>, vector<32x32xf32>, vector<16x32xf32> -> vector<16x32xf32>
    %c0_21 = arith.constant 0 : index
    %c0_22 = arith.constant 0 : index
    %43 = vector.load %arg7[%c0_21, %c0_22] : memref<1x32xf32, #tpu.memory_space<vmem>>, vector<1x32xf32>
    %44 = vector.broadcast %43 : vector<1x32xf32> to vector<16x32xf32>
    %45 = arith.addf %42, %44 : vector<16x32xf32>
    %c0_23 = arith.constant 0 : index
    %c0_24 = arith.constant 0 : index
    %46 = vector.load %arg8[%c0_23, %c0_24] : memref<16x32xf32, #tpu.memory_space<vmem>>, vector<16x32xf32>
    tpu.vector_store %arg8[%c0_23, %c0_24], %45 {strides = array<i32>} : memref<16x32xf32, #tpu.memory_space<vmem>>, vector<16x32xf32>,
    return
  }
  func.func @transform_0(%arg0: i32) -> (i32, i32) {
    %c0_i32 = arith.constant 0 : i32
    %c0_i32_0 = arith.constant 0 : i32
    return %arg0, %c0_i32 : i32, i32
  }
  func.func @transform_1(%arg0: i32) -> (i32, i32) {
    %c0_i32 = arith.constant 0 : i32
    %c0_i32_0 = arith.constant 0 : i32
    %c0_i32_1 = arith.constant 0 : i32
    return %c0_i32, %c0_i32_0 : i32, i32
  }
  func.func @transform_2(%arg0: i32) -> (i32, i32) {
    %c0_i32 = arith.constant 0 : i32
    %c0_i32_0 = arith.constant 0 : i32
    %c0_i32_1 = arith.constant 0 : i32
    return %c0_i32, %c0_i32_0 : i32, i32
  }
  func.func @transform_3(%arg0: i32) -> (i32, i32) {
    %c0_i32 = arith.constant 0 : i32
    %c0_i32_0 = arith.constant 0 : i32
    %c0_i32_1 = arith.constant 0 : i32
    return %c0_i32, %c0_i32_0 : i32, i32
  }
  func.func @transform_4(%arg0: i32) -> (i32, i32) {
    %c0_i32 = arith.constant 0 : i32
    %c0_i32_0 = arith.constant 0 : i32
    %c0_i32_1 = arith.constant 0 : i32
    return %c0_i32, %c0_i32_0 : i32, i32
  }
  func.func @transform_5(%arg0: i32) -> (i32, i32) {
    %c0_i32 = arith.constant 0 : i32
    %c0_i32_0 = arith.constant 0 : i32
    %c0_i32_1 = arith.constant 0 : i32
    return %c0_i32, %c0_i32_0 : i32, i32
  }
  func.func @transform_6(%arg0: i32) -> (i32, i32) {
    %c0_i32 = arith.constant 0 : i32
    %c0_i32_0 = arith.constant 0 : i32
    %c0_i32_1 = arith.constant 0 : i32
    return %c0_i32, %c0_i32_0 : i32, i32
  }
  func.func @transform_7(%arg0: i32) -> (i32, i32) {
    %c0_i32 = arith.constant 0 : i32
    %c0_i32_0 = arith.constant 0 : i32
    return %arg0, %c0_i32 : i32, i32
  }
}

</mosaic_0001>

<bundles_post_ra>
// kernel: tpu_custom_call.1
= control target key start
LH: loop header
LB: loop body
LE: loop exit
PB: predicated region body
PF: predicated region fallthrough
CT: control target
= control target key end

     0   :  { %12 = vsyncpa [#allocation3], 0  ;;  %s635_s0 = inlined_call_operand.hbm [shape: f32[16,11], index: 0, kind: input, shape index: {}]   ;;  %s636_s1 = inlined_call_operand.hbm [shape: f32[11,32], index: 1, kind: input, shape index: {}]   ;;  %s637_s2 = inlined_call_operand.vmem [shape: f32[1,32], index: 2, kind: input, shape index: {}]   ;;  %s638_s3 = inlined_call_operand.vmem [shape: f32[1,32], index: 3, kind: input, shape index: {}]   ;;  %s639_s4 = inlined_call_operand.vmem [shape: f32[1,32], index: 4, kind: input, shape index: {}]   ;;  %s640_s5 = inlined_call_operand.hbm [shape: f32[32,32], index: 5, kind: input, shape index: {}]   ;;  %s641_s6 = inlined_call_operand.vmem [shape: f32[1,32], index: 6, kind: input, shape index: {}]   ;;  %s642_s7 = inlined_call_operand.hbm [shape: f32[16,32], index: 7, kind: output, shape index: {}]  }
   0x1   :  { %13 = vsyncpa [#allocation6], 0 }
   0x2   :  { %14 = vsyncpa [#allocation4], 0  ;;  %s501_s24 = smov [#allocation5]   ;;  %s502_s26 = smov [#allocation2]  }
   0x3   :  { %s32_s25 = sshll.u32 %s501_s24, 4  ;;  %s20_s27 = sshll.u32 %s502_s26, 4  ;;  %s33_s25 = int_to_ptr.vmem [resolvable:$true] %s32_s25  ;;  %s548_s27 = int_to_ptr.vmem [resolvable:$true] %s20_s27 }
   0x4   :  { %s407_s30 = scalar_lea.hbm %s636_s1, 256 }
   0x5   :  { %p408_p0 = scmp.ne.s32.totalorder %s636_s1, %s407_s30  ;;  %p411_p1 = scmp.lt.u32.totalorder %s407_s30, %s636_s1 }
   0x7   :  { %p413_p2 = pnand %p411_p1, %p408_p0 }
   0x9   :  { %416 = shalt.err (!%p413_p2)
}
   0xa   :  { %s417_s12 = scalar_lea.vmem %s33_s25, 256  ;;  %p422_p4 = scmp.lt.s32.totalorder %s33_s25, %s33_s25 }
   0xb   :  { %p418_p3 = scmp.ne.s32.totalorder %s33_s25, %s417_s12  ;;  %p423_p5 = scmp.lt.s32.totalorder %s417_s12, %s417_s12 }
   0xd   :  { %p424_p6 = por %p423_p5, %p422_p4 }
   0xf   :  { %p425_p7 = pnand %p424_p6, %p418_p3 }
  0x11   :  { %428 = shalt.err (!%p425_p7)
}
  0x12   :  { %s503_s13 = smov 128   ;;  %s504_s14 = smov 8  }
  0x13   :  { %38 = dma.hbm_to_vmem [thread:$0]  %s636_s1, 256, %s33_s25, [#allocation6], %s503_s13, %s503_s13, %s504_s14  }
  0x14   :  { %s429_s19 = scalar_lea.hbm %s635_s0, 256 }
  0x15   :  { %p430_p8 = scmp.ne.s32.totalorder %s635_s0, %s429_s19  ;;  %p433_p9 = scmp.lt.u32.totalorder %s429_s19, %s635_s0 }
  0x17   :  { %p435_p10 = pnand %p433_p9, %p430_p8 }
  0x19   :  { %438 = shalt.err (!%p435_p10)
}
  0x1a   :  { %s439_s24 = scalar_lea.vmem %s548_s27, 256  ;;  %p444_p12 = scmp.lt.s32.totalorder %s548_s27, %s548_s27 }
  0x1b   :  { %p440_p11 = scmp.ne.s32.totalorder %s548_s27, %s439_s24  ;;  %p445_p13 = scmp.lt.s32.totalorder %s439_s24, %s439_s24 }
  0x1d   :  { %p446_p0 = por %p445_p13, %p444_p12 }
  0x1f   :  { %p447_p1 = pnand %p446_p0, %p440_p11 }
  0x21   :  { %450 = shalt.err (!%p447_p1)
}
  0x22   :  { %26 = dma.hbm_to_vmem [thread:$0]  %s635_s0, 256, %s548_s27, [#allocation3], %s503_s13, %s503_s13, %s504_s14  }
  0x23   :  { %s505_s26 = smov [#allocation7]   ;;  %s451_s8 = scalar_lea.hbm %s640_s5, 512 }
  0x24   :  { %s50_s28 = sshll.u32 %s505_s26, 4  ;;  %p452_p2 = scmp.ne.s32.totalorder %s640_s5, %s451_s8  ;;  %s51_s28 = int_to_ptr.vmem [resolvable:$true] %s50_s28 }
  0x25   :  { %p455_p3 = scmp.lt.u32.totalorder %s451_s8, %s640_s5 }
  0x27   :  { %p457_p4 = pnand %p455_p3, %p452_p2 }
  0x29   :  { %460 = shalt.err (!%p457_p4)
}
  0x2a   :  { %s461_s15 = scalar_lea.vmem %s51_s28, 512  ;;  %p466_p6 = scmp.lt.s32.totalorder %s51_s28, %s51_s28 }
  0x2b   :  { %p462_p5 = scmp.ne.s32.totalorder %s51_s28, %s461_s15  ;;  %p467_p7 = scmp.lt.s32.totalorder %s461_s15, %s461_s15 }
  0x2d   :  { %p468_p8 = por %p467_p7, %p466_p6 }
  0x2f   :  { %p469_p9 = pnand %p468_p8, %p462_p5 }
  0x31   :  { %472 = shalt.err (!%p469_p9)
}
  0x32   :  { %56 = dma.hbm_to_vmem [thread:$0]  %s640_s5, 512, %s51_s28, [#allocation6], %s503_s13, %s503_s13, %s504_s14  }
  0x33   :  { %495 = dma.done.wait [#allocation3], 256  }
  0x34   :  { %496 = vsyncadd [#allocation3], 4294967040 }
  0x35   :  { %497 = dma.done.wait [#allocation6], 768  }
  0x36   :  { %498 = vsyncadd [#allocation6], 4294966528  ;;  %vm86_vm0 = vcmask 1042432   ;;  %vm79_vm1 = vcmask 89088   ;;  %vm506_vm2 = vmmov 1   ;;  %v70_v0 = vld [vmem:[#allocation5] sm:$0xff] }
  0x37   :  { %vm379_vm3 = vmpackc.low %vm86_vm0, %vm506_vm2  ;;  %v71_v1 = vld [vmem:[#allocation5 + $0x8] sm:$0x7]  ;;  %v68_v2 = vld [vmem:[#allocation2] sm:$0xff]  ;;  %vm167_vm4 = vcmask 261120   ;;  %s507_s20 = smov [#allocation8]  }
  0x38   :  { %v378_v3 = vpack.c.bf16 %v71_v1, %v70_v0  ;;  %364 = vmatprep.mubr.msk.f32.mxu0 %vm79_vm1, %v68_v2  ;;  %v69_v4 = vld [vmem:[#allocation2 + $0x8] sm:$0xff]  ;;  %v341_v5 = vld [vmem:[%s637_s2] ss:$0 sm:$0xff]  ;;  %v231_v24 = vld [vmem:[#allocation7 + $0x10] sm:$0xff]  ;;  %s328_s21 = sshll.u32 %s507_s20, 4  ;;  %s329_s21 = int_to_ptr.vmem [resolvable:$true] %s328_s21 }
  0x39   :  { %v229_v22 = vld [vmem:[#allocation7] sm:$0xff]  ;;  %v230_v23 = vld [vmem:[#allocation7 + $0x8] sm:$0xff]  ;;  %v232_v26 = vld [vmem:[#allocation7 + $0x18] sm:$0xff]  ;;  %s473_s22 = scalar_lea.vmem %s329_s21, 256  ;;  %p478_p11 = scmp.lt.s32.totalorder %s329_s21, %s329_s21 }
  0x3a   :  { %380 = vmatprep.subr.msk.bf16.mxu0 %vm379_vm3, %v378_v3  ;;  %v384_v25 = vpack.c.bf16 %v230_v23, %v229_v22  ;;  %v388_v27 = vpack.c.bf16 %v232_v26, %v231_v24  ;;  %v345_v35 = vld [vmem:[%s638_s3] ss:$0 sm:$0xff]  ;;  %p474_p10 = scmp.ne.s32.totalorder %s329_s21, %s473_s22  ;;  %p479_p12 = scmp.lt.s32.totalorder %s473_s22, %s473_s22 }
  0x3b   :  { %383 = vmatpush3.bf16.msk.msra.mxu0 %vm379_vm3, %v378_v3  ;;  %v346_v37 = vld [vmem:[%s639_s4] ss:$0 sm:$0xff] }
  0x3c   :  { %385 = vmatprep.subr.bf16.mxu1 %v384_v25  ;;  %v347_v62 = vld [vmem:[%s641_s6] ss:$0 sm:$0xff]  ;;  %p480_p13 = por %p479_p12, %p478_p11 }
  0x3d   :  { %387 = vmatpush3.bf16.msra.mxu1 %v384_v25 }
  0x3e   :  { %365 = vmatmul.mubr.msk.f32.vlgmr.msra.gmra.mrb[0].mxu0 %vm79_vm1, %v69_v4  ;;  %389 = vmatprep.subr.bf16.mxu1 %v388_v27  ;;  %p481_p0 = pnand %p480_p13, %p474_p10 }
  0x41   :  { %391 = vmatpush3.bf16.msra.mxu1 %v388_v27 }
 0x111   :  { %v366_v6 = vpop.f32.mrb[0].mxu0 }
 0x112   :  { %v156_v7 = vpop.f32.mrb[1].mxu0  ;;  %v162_v9 = vadd.f32 %v366_v6, %v341_v5 }
 0x113   :  { %v157_v8 = vadd.f32 %v341_v5, %v156_v7 }
 0x114   :  { %v171_v11 = vsel %vm167_vm4, %v162_v9, 0.0 }
 0x115   :  { %v168_v10 = vsel %vm167_vm4, %v157_v8, 0.0 }
 0x116   :  { %169 = vadd.xlane.f32.xlu0 %v168_v10 }
 0x11a   :  { %172 = vadd.xlane.f32.xlu0 %v171_v11 }
 0x1a3   :  { %v170_v12 = vpop.xlane.xlu0 %169 }
 0x1a4   :  { %v175_v13 = vmul.f32 0.03125, %v170_v12 }
 0x1a6   :  { %v177_v14 = vsub.f32 %v157_v8, %v175_v13 }
 0x1a7   :  { %v173_v15 = vpop.xlane.xlu0 %172 }
 0x1a8   :  { %v176_v16 = vmul.f32 0.03125, %v173_v15  ;;  %v179_v17 = vmul.f32 %v177_v14, %v177_v14 }
 0x1aa   :  { %v178_v18 = vsub.f32 %v162_v9, %v176_v16  ;;  %v181_v19 = vsel %vm167_vm4, %v179_v17, 0.0 }
 0x1ab   :  { %182 = vadd.xlane.f32.xlu1 %v181_v19 }
 0x1ac   :  { %v180_v20 = vmul.f32 %v178_v18, %v178_v18 }
 0x1ae   :  { %v184_v21 = vsel %vm167_vm4, %v180_v20, 0.0 }
 0x1af   :  { %185 = vadd.xlane.f32.xlu1 %v184_v21 }
 0x238   :  { %v183_v28 = vpop.xlane.xlu1 %182 }
 0x239   :  { %v187_v29 = vmul.f32 0.03125, %v183_v28 }
 0x23b   :  { %v189_v30 = vadd.f32 1e-05, %v187_v29 }
 0x23c   :  { %v186_v31 = vpop.xlane.xlu1 %185 }
 0x23d   :  { %399 = vrsqrt.f32 %v189_v30  ;;  %v188_v32 = vmul.f32 0.03125, %v186_v31 }
 0x23f   :  { %v190_v33 = vadd.f32 1e-05, %v188_v32 }
 0x241   :  { %401 = vrsqrt.f32 %v190_v33 }
 0x247   :  { %v400_v34 = vpop.eup %399 }
 0x248   :  { %v193_v36 = vmul.f32 %v400_v34, %v177_v14 }
 0x24a   :  { %v201_v38 = vmul.f32 %v345_v35, %v193_v36 }
 0x24b   :  { %v402_v39 = vpop.eup %401 }
 0x24c   :  { %v194_v40 = vmul.f32 %v402_v39, %v178_v18  ;;  %v209_v41 = vadd.f32 %v346_v37, %v201_v38 }
 0x24e   :  { %v202_v42 = vmul.f32 %v345_v35, %v194_v40  ;;  %v211_v43 = vmul.f32 %v209_v41, %v209_v41 }
 0x250   :  { %v210_v44 = vadd.f32 %v346_v37, %v202_v42  ;;  %v213_v45 = vmul.f32 %v211_v43, %v209_v41 }
 0x252   :  { %v215_v46 = vmul.f32 0.044715, %v213_v45  ;;  %v212_v47 = vmul.f32 %v210_v44, %v210_v44 }
 0x254   :  { %v217_v48 = vadd.f32 %v215_v46, %v209_v41  ;;  %v214_v49 = vmul.f32 %v212_v47, %v210_v44 }
 0x256   :  { %v219_v50 = vmul.f32 0.7978846, %v217_v48  ;;  %v216_v51 = vmul.f32 0.044715, %v214_v49 }
 0x258   :  { %403 = vtanh.f32 %v219_v50  ;;  %v218_v52 = vadd.f32 %v216_v51, %v210_v44 }
 0x25a   :  { %v220_v53 = vmul.f32 0.7978846, %v218_v52 }
 0x25c   :  { %405 = vtanh.f32 %v220_v53 }
 0x262   :  { %v404_v54 = vpop.eup %403 }
 0x263   :  { %v223_v55 = vadd.f32 1.0, %v404_v54 }
 0x265   :  { %v225_v56 = vmul.f32 0.5, %v223_v55 }
 0x266   :  { %v406_v57 = vpop.eup %405 }
 0x267   :  { %v227_v58 = vmul.f32 %v225_v56, %v209_v41  ;;  %v224_v59 = vadd.f32 1.0, %v406_v57 }
 0x269   :  { %375 = vmatprep.mubr.msk.f32.mxu1 %vm167_vm4, %v227_v58  ;;  %v226_v60 = vmul.f32 0.5, %v224_v59 }
 0x26b   :  { %v228_v61 = vmul.f32 %v226_v60, %v210_v44 }
 0x26d   :  { %376 = vmatmul.mubr.msk.f32.vlgmr.msra.gmra.mrb[0].mxu1 %vm167_vm4, %v228_v61 }
 0x340   :  { %v377_v63 = vpop.f32.mrb[0].mxu1 }
 0x341   :  { %v318_v0 = vadd.f32 %v377_v63, %v347_v62  ;;  %v312_v1 = vpop.f32.mrb[1].mxu1 }
 0x342   :  { %v313_v2 = vadd.f32 %v347_v62, %v312_v1 }
 0x343   :  { %322 = vst.msk [vmem:[#allocation8 + $0x8] sm:$0xff] %vm167_vm4, %v318_v0 }
 0x344   :  { %321 = vst.msk [vmem:[#allocation8] sm:$0xff] %vm167_vm4, %v313_v2 }
 0x345   :  { %484 = shalt.err (!%p481_p0)
}
 0x346   :  { %s485_s24 = scalar_lea.hbm %s642_s7, 256 }
 0x347   :  { %p486_p1 = scmp.ne.s32.totalorder %s642_s7, %s485_s24  ;;  %p489_p2 = scmp.lt.u32.totalorder %s485_s24, %s642_s7 }
 0x349   :  { %p491_p3 = pnand %p489_p2, %p486_p1 }
 0x34b   :  { %494 = shalt.err (!%p491_p3)
}
 0x34c   :  { %334 = dma.vmem_to_hbm [thread:$0]  %s329_s21, 256, %s642_s7, [#allocation4], %s503_s13, %s503_s13, %s504_s14  }
 0x34d   :  { %499 = dma.done.wait [#allocation4], 256  }
 0x34e   :  { %500 = vsyncadd [#allocation4], 4294967040 }
 0x34f   :  { %338 = vsyncpa [#allocation3], 1 }
 0x350   :  { %339 = vsyncpa [#allocation6], 1 }
 0x351   :  { %340 = vsyncpa [#allocation4], 1 }

</bundles_post_ra>
